<compile_context>
chip_gen: v6e
topology: v6e:2x2x1
jax: 0.10.0
libtpu: 0.0.40
codegen_flags: <defaults>
</compile_context>

<pallas_src>
import functools

import jax
import jax.numpy as jnp
from jax.experimental import pallas as pl
from jax.experimental.pallas import tpu as pltpu

_LANE = 128
_MAX_TILE_MULT = 4          # T_out <= 512 keeps all buffers far below v7x's 64 MiB VMEM
_VMEM_LIMIT = 32 * 1024 * 1024


# --------------------------------------------------------------------------------------
# Fused MDC kernel: (dilated-conv sum / D) -> conv_out(stride s) -> leaky_relu(0.1)
# --------------------------------------------------------------------------------------
def _mdc_fused_kernel(xc_ref, xn_ref, w1_ref, b1_ref, w2_ref, b2_ref, o_ref, *scratch,
                      K, d, s, Lh, T_out, alpha):
    # xc/xn: (1, Cin, T_in) f32  (tile j and tile j+1 -> halo)
    # s == 1: w1 (C, K*Cin) bf16, w2 (C, 3C) bf16, b1/b2 (C, 1) f32
    # s  > 1: w1 (K*Cin, C) bf16, w2 (3C, C) bf16, b1/b2 (1, C) f32
    # o_ref: (1, C, T_out) f32
    f32 = jnp.float32
    xb = jnp.concatenate([xc_ref[0], xn_ref[0]], axis=-1)            # (Cin, 2*T_in) f32

    if s == 1:
        xb16 = xb.astype(jnp.bfloat16)
        # stage 1: K taps packed into the contraction dim -> one matmul
        x1 = jnp.concatenate([xb16[:, k * d:k * d + Lh] for k in range(K)], axis=0)
        h = jnp.dot(w1_ref[...], x1, preferred_element_type=f32) + b1_ref[...]  # (C, Lh)
        h16 = h.astype(jnp.bfloat16)
        # stage 2: 3 taps packed into the contraction dim (stride 1 -> contiguous slices)
        x2 = jnp.concatenate([h16[:, k2:k2 + T_out] for k2 in range(3)], axis=0)
        out = jnp.dot(w2_ref[...], x2, preferred_element_type=f32) + b2_ref[...]  # (C, T_out)
    else:
        h_scr = scratch[0]                                            # (Lh, C) bf16
        xbT = xb.T.astype(jnp.bfloat16)                               # (2*T_in, Cin)
        x1 = jnp.concatenate([xbT[k * d:k * d + Lh, :] for k in range(K)], axis=1)
        hT = jnp.dot(x1, w1_ref[...], preferred_element_type=f32) + b1_ref[...]  # (Lh, C)
        h_scr[...] = hT.astype(jnp.bfloat16)
        # stride-s decimation via sublane-strided reads from the scratch ref
        x2 = jnp.concatenate(
            [h_scr[pl.ds(k2, T_out, stride=s), :] for k2 in range(3)], axis=1)    # (T_out, 3C)
        outT = jnp.dot(x2, w2_ref[...], preferred_element_type=f32) + b2_ref[...]  # (T_out, C)
        out = outT.T                                                  # (C, T_out)

    out = jnp.where(out >= 0, out, f32(alpha) * out)                  # leaky_relu(0.1), f32
    o_ref[0] = out.astype(o_ref.dtype)


def _mdc_pallas(x_pad, layer, *, T_out, n_tiles, Lh):
    B, Cin, _ = x_pad.shape
    C = layer["C"]
    K, d, s = layer["K"], layer["dilation"], layer["stride"]
    T_in = T_out * s
    kern = functools.partial(_mdc_fused_kernel, K=K, d=d, s=s, Lh=Lh, T_out=T_out, alpha=0.1)
    return pl.pallas_call(
        kern,
        out_shape=jax.ShapeDtypeStruct((B, C, n_tiles * T_out), jnp.float32),
        grid=(B, n_tiles),
        in_specs=[
            pl.BlockSpec((1, Cin, T_in), lambda b, j: (b, 0, j)),       # tile j
            pl.BlockSpec((1, Cin, T_in), lambda b, j: (b, 0, j + 1)),   # tile j+1 (halo)
            pl.BlockSpec(layer["w1"].shape, lambda b, j: (0, 0)),
            pl.BlockSpec(layer["b1"].shape, lambda b, j: (0, 0)),
            pl.BlockSpec(layer["w2"].shape, lambda b, j: (0, 0)),
            pl.BlockSpec(layer["b2"].shape, lambda b, j: (0, 0)),
        ],
        out_specs=pl.BlockSpec((1, C, T_out), lambda b, j: (b, 0, j)),
        scratch_shapes=([pltpu.VMEM((Lh, C), jnp.bfloat16)] if s > 1 else []),
        compiler_params=pltpu.CompilerParams(
            dimension_semantics=("parallel", "parallel"),
            vmem_limit_bytes=_VMEM_LIMIT),
    )(x_pad, x_pad, layer["w1"], layer["b1"], layer["w2"], layer["b2"])


# --------------------------------------------------------------------------------------
# conv_post kernel (Cout = 1, kernel 3, stride 1): VPU broadcast-mul + channel reduce
# --------------------------------------------------------------------------------------
def _post_kernel(xc_ref, xn_ref, w_ref, b_ref, o_ref, *, T):
    xb = jnp.concatenate([xc_ref[0], xn_ref[0]], axis=-1)             # (C, 2T) f32
    acc = jnp.zeros((1, T), jnp.float32)
    for k in range(3):
        acc = acc + jnp.sum(w_ref[:, k:k + 1] * xb[:, k:k + T], axis=0, keepdims=True)
    o_ref[0] = (acc + b_ref[...]).astype(o_ref.dtype)


# --------------------------------------------------------------------------------------
# Host-side wrappers (padding / tiling arithmetic, no tap materialization in HBM)
# --------------------------------------------------------------------------------------
def _pad_len(x, target):
    cur = x.shape[-1]
    if cur >= target:
        return x
    return jnp.pad(x, ((0, 0), (0, 0), (0, target - cur)))


def _choose_tile(l_out):
    return _LANE * max(1, min(_MAX_TILE_MULT, pl.cdiv(l_out, _LANE)))


def mdc_forward(x_pad, l_in, layer):
    """x_pad: (B, Cin, Lpad) with true length l_in. Returns padded output + true L_out."""
    K, d, s = layer["K"], layer["dilation"], layer["stride"]
    l_mid = l_in - d * (K - 1)
    assert l_mid >= 3, "input too short for this MDC"
    l_out = (l_mid - 3) // s + 1
    T_out = _choose_tile(l_out)
    n_tiles = pl.cdiv(l_out, T_out)
    T_in = T_out * s
    Lh = s * (T_out - 1) + 3
    assert Lh + d * (K - 1) <= 2 * T_in, "halo does not fit in two consecutive tiles"
    need_x = (n_tiles + 1) * T_in
    assert need_x >= l_in
    xp = _pad_len(x_pad, need_x)
    out = _mdc_pallas(xp, layer, T_out=T_out, n_tiles=n_tiles, Lh=Lh)
    return out, l_out


def prep_params(params):
    """Fold D-averaging into pre-summed weights, pack taps into the contraction dim,
    pick the matmul orientation per layer (stride 1 vs stride > 1), cast weights to bf16."""
    mdcs = []
    for layer in params["mdcs"]:
        dils = layer["dilations"]
        assert all(dd == dils[0] for dd in dils), \
            "valid-padding MDC sum requires equal dilations (as in the PyTorch forward)"
        D = len(dils)
        d = int(dils[0])
        s = int(layer["stride"])
        w_sum = sum(layer["dil_w"]) / D                  # (C, Cin, K), 1/D folded in
        b_sum = sum(layer["dil_b"]) / D                  # (C,)
        C, Cin, K = w_sum.shape
        w1 = jnp.transpose(w_sum, (0, 2, 1)).reshape(C, K * Cin)          # cols = k*Cin + c
        w2 = jnp.transpose(layer["out_w"], (0, 2, 1)).reshape(C, 3 * C)   # cols = k2*C + c
        if s > 1:                                        # transposed-orientation path
            w1, w2 = w1.T, w2.T
            b1 = b_sum.reshape(1, C)
            b2 = layer["out_b"].reshape(1, C)
        else:
            b1 = b_sum.reshape(C, 1)
            b2 = layer["out_b"].reshape(C, 1)
        mdcs.append(dict(K=K, dilation=d, stride=s, C=C,
                         w1=w1.astype(jnp.bfloat16), b1=b1.astype(jnp.float32),
                         w2=w2.astype(jnp.bfloat16), b2=b2.astype(jnp.float32)))
    return dict(
        mdcs=mdcs,
        post_w=params["post_w"][0].astype(jnp.float32),   # (C_last, 3)
        post_b=params["post_b"].reshape(1, 1).astype(jnp.float32),
    )


def subband_discriminator_forward(x, params):
    prepped = prep_params(params)
    l_true = x.shape[-1]
    h = x.astype(jnp.float32)
    fmap_padded = []
    for layer in prepped["mdcs"]:
        h, l_true = mdc_forward(h, l_true, layer)
        fmap_padded.append((h, l_true))

    # conv_post: Conv1d(C, 1, 3), stride 1
    # TODO(synk): could be fused into the last MDC kernel to avoid one more HBM round-trip.
    l_post = l_true - 2
    assert l_post >= 1
    T_p = _choose_tile(l_post)
    n_p = pl.cdiv(l_post, T_p)
    hp = _pad_len(h, (n_p + 1) * T_p)
    B, C, _ = hp.shape
    y = pl.pallas_call(
        functools.partial(_post_kernel, T=T_p),
        out_shape=jax.ShapeDtypeStruct((B, 1, n_p * T_p), jnp.float32),
        grid=(B, n_p),
        in_specs=[
            pl.BlockSpec((1, C, T_p), lambda b, j: (b, 0, j)),
            pl.BlockSpec((1, C, T_p), lambda b, j: (b, 0, j + 1)),
            pl.BlockSpec((C, 3), lambda b, j: (0, 0)),
            pl.BlockSpec((1, 1), lambda b, j: (0, 0)),
        ],
        out_specs=pl.BlockSpec((1, 1, T_p), lambda b, j: (b, 0, j)),
        compiler_params=pltpu.CompilerParams(
            dimension_semantics=("parallel", "parallel"),
            vmem_limit_bytes=_VMEM_LIMIT),
    )(hp, hp, prepped["post_w"], prepped["post_b"])

    y = y[:, 0, :l_post]                                   # torch.flatten(x, 1, -1)
    fmap = [hh[..., :lt] for hh, lt in fmap_padded]
    return y, fmap


# --------------------------------------------------------------------------------------
# Pure-JAX f32 reference (lax.conv, HIGHEST precision) to validate the Pallas path
# --------------------------------------------------------------------------------------
def _conv1d_ref(x, w, b, stride=1, dilation=1):
    y = jax.lax.conv_general_dilated(
        x, w, window_strides=(stride,), padding="VALID", rhs_dilation=(dilation,),
        dimension_numbers=("NCH", "OIH", "NCH"), precision=jax.lax.Precision.HIGHEST,
    )
    return y + b[None, :, None]


def ref_forward(x, params):
    fmap = []
    for layer in params["mdcs"]:
        xs = None
        for w, b, d in zip(layer["dil_w"], layer["dil_b"], layer["dilations"]):
            y = _conv1d_ref(x, w, b, stride=1, dilation=d)
            xs = y if xs is None else xs + y
        x = xs / len(layer["dilations"])
        x = _conv1d_ref(x, layer["out_w"], layer["out_b"], stride=layer["stride"], dilation=1)
        x = jnp.where(x >= 0, x, 0.1 * x)
        fmap.append(x)
    x = _conv1d_ref(x, params["post_w"], params["post_b"])
    return x.reshape(x.shape[0], -1), fmap


# --------------------------------------------------------------------------------------
# Deterministic parameter init (shapes follow SubBandDiscriminator.__init__)
# --------------------------------------------------------------------------------------
def init_params(key, init_channel, channels, kernel, strides, dilations):
    params = {"mdcs": []}
    in_c = init_channel
    for c, s, ds in zip(channels, strides, dilations):
        layer = {"dilations": tuple(ds), "stride": int(s), "dil_w": [], "dil_b": []}
        for _ in ds:
            key, k1, k2 = jax.random.split(key, 3)
            layer["dil_w"].append(0.1 * jax.random.normal(k1, (c, in_c, kernel), jnp.float32))
            layer["dil_b"].append(0.1 * jax.random.normal(k2, (c,), jnp.float32))
        key, k1, k2 = jax.random.split(key, 3)
        layer["out_w"] = 0.1 * jax.random.normal(k1, (c, c, 3), jnp.float32)
        layer["out_b"] = 0.1 * jax.random.normal(k2, (c,), jnp.float32)
        params["mdcs"].append(layer)
        in_c = c
    key, k1, k2 = jax.random.split(key, 3)
    params["post_w"] = 0.1 * jax.random.normal(k1, (1, in_c, 3), jnp.float32)
    params["post_b"] = 0.1 * jax.random.normal(k2, (1,), jnp.float32)
    return params


if __name__ == "__main__":
    key = jax.random.PRNGKey(0)
    key, pkey, xkey = jax.random.split(key, 3)

    # Small config consistent with the module:
    init_channel = 4
    channels = [8, 16]
    kernel = 3
    strides = [1, 2]
    dilations = [[1, 1, 1], [2, 2]]  # equal within each MDC (required by valid-conv sum)

    params = init_params(pkey, init_channel, channels, kernel, strides, dilations)
    x = jax.random.normal(xkey, (2, init_channel, 64), jnp.float32)  # (B, C, L)

    out, fmap = subband_discriminator_forward(x, params)
    out = jax.block_until_ready(out)
    fmap = [jax.block_until_ready(f) for f in fmap]

    out_ref, fmap_ref = ref_forward(x, params)
    assert out.shape == out_ref.shape, (out.shape, out_ref.shape)
    assert all(a.shape == b.shape for a, b in zip(fmap, fmap_ref))
    # bf16 matmul inputs (f32 accumulation) vs f32 HIGHEST reference -> relaxed tolerance
    assert jnp.allclose(out, out_ref, atol=2e-2, rtol=2e-2)
    for a, b in zip(fmap, fmap_ref):
        assert jnp.allclose(a, b, atol=2e-2, rtol=2e-2)

    print("KERNEL_OK")
</pallas_src>

<mosaic_0001>
module attributes {stable_mosaic.version = 11 : i64} {
  func.func @_mdc_fused_kernel(%arg0: i32, %arg1: i32, %arg2: memref<1x4x128xf32, #tpu.memory_space<vmem>>, %arg3: memref<1x4x128xf32, #tpu.memory_space<vmem>>, %arg4: memref<8x12xbf16, #tpu.memory_space<vmem>>, %arg5: memref<8x1xf32, #tpu.memory_space<vmem>>, %arg6: memref<8x24xbf16, #tpu.memory_space<vmem>>, %arg7: memref<8x1xf32, #tpu.memory_space<vmem>>, %arg8: memref<1x8x128xf32, #tpu.memory_space<vmem>>) attributes {dimension_semantics = [#tpu.dimension_semantics<parallel>, #tpu.dimension_semantics<parallel>], iteration_bounds = array<i64: 2, 1>, scalar_prefetch = 0 : i64, scratch_operands = 0 : i64, tpu.core_type = #tpu.core_type<tc>, window_params = [{transform_indices = @transform_0, window_bounds = array<i64: 1, 4, 128>}, {transform_indices = @transform_1, window_bounds = array<i64: 1, 4, 128>}, {pipeline_mode = #tpu.pipeline_mode<synchronous>, transform_indices = @transform_2, window_bounds = array<i64: 8, 12>}, {pipeline_mode = #tpu.pipeline_mode<synchronous>, transform_indices = @transform_3, window_bounds = array<i64: 8, 1>}, {pipeline_mode = #tpu.pipeline_mode<synchronous>, transform_indices = @transform_4, window_bounds = array<i64: 8, 24>}, {pipeline_mode = #tpu.pipeline_mode<synchronous>, transform_indices = @transform_5, window_bounds = array<i64: 8, 1>}, {transform_indices = @transform_6, window_bounds = array<i64: 1, 8, 128>}]} {
    %c0 = arith.constant 0 : index
    %c0_0 = arith.constant 0 : index
    %c0_1 = arith.constant 0 : index
    %0 = vector.load %arg2[%c0, %c0_0, %c0_1] : memref<1x4x128xf32, #tpu.memory_space<vmem>>, vector<1x4x128xf32>
    %1 = vector.shape_cast %0 : vector<1x4x128xf32> to vector<4x128xf32>
    %c0_2 = arith.constant 0 : index
    %c0_3 = arith.constant 0 : index
    %c0_4 = arith.constant 0 : index
    %2 = vector.load %arg3[%c0_2, %c0_3, %c0_4] : memref<1x4x128xf32, #tpu.memory_space<vmem>>, vector<1x4x128xf32>
    %3 = vector.shape_cast %2 : vector<1x4x128xf32> to vector<4x128xf32>
    %4 = tpu.concatenate %1, %3 in 1 : vector<4x128xf32>, vector<4x128xf32> -> vector<4x256xf32>
    %5 = arith.truncf %4 : vector<4x256xf32> to vector<4x256xbf16>
    %6 = vector.extract_strided_slice %5 {offsets = [0, 0], sizes = [4, 130], strides = [1, 1]} : vector<4x256xbf16> to vector<4x130xbf16>
    %7 = vector.extract_strided_slice %5 {offsets = [0, 1], sizes = [4, 130], strides = [1, 1]} : vector<4x256xbf16> to vector<4x130xbf16>
    %8 = vector.extract_strided_slice %5 {offsets = [0, 2], sizes = [4, 130], strides = [1, 1]} : vector<4x256xbf16> to vector<4x130xbf16>
    %9 = tpu.concatenate %6, %7, %8 in 0 : vector<4x130xbf16>, vector<4x130xbf16>, vector<4x130xbf16> -> vector<12x130xbf16>
    %c0_5 = arith.constant 0 : index
    %c0_6 = arith.constant 0 : index
    %10 = vector.load %arg4[%c0_5, %c0_6] : memref<8x12xbf16, #tpu.memory_space<vmem>>, vector<8x12xbf16>
    %cst = arith.constant dense<0.000000e+00> : vector<8x130xf32>
    %11 = tpu.matmul %10, %9, %cst {dimension_numbers = #tpu.dot_dimension_numbers<[1], [0], [0], [1], [0, 0, 1, 1], [], []>} : vector<8x12xbf16>, vector<12x130xbf16>, vector<8x130xf32> -> vector<8x130xf32>
    %c0_7 = arith.constant 0 : index
    %c0_8 = arith.constant 0 : index
    %12 = vector.load %arg5[%c0_7, %c0_8] : memref<8x1xf32, #tpu.memory_space<vmem>>, vector<8x1xf32>
    %13 = vector.broadcast %12 : vector<8x1xf32> to vector<8x130xf32>
    %14 = arith.addf %11, %13 : vector<8x130xf32>
    %15 = arith.truncf %14 : vector<8x130xf32> to vector<8x130xbf16>
    %16 = vector.extract_strided_slice %15 {offsets = [0, 0], sizes = [8, 128], strides = [1, 1]} : vector<8x130xbf16> to vector<8x128xbf16>
    %17 = vector.extract_strided_slice %15 {offsets = [0, 1], sizes = [8, 128], strides = [1, 1]} : vector<8x130xbf16> to vector<8x128xbf16>
    %18 = vector.extract_strided_slice %15 {offsets = [0, 2], sizes = [8, 128], strides = [1, 1]} : vector<8x130xbf16> to vector<8x128xbf16>
    %19 = tpu.concatenate %16, %17, %18 in 0 : vector<8x128xbf16>, vector<8x128xbf16>, vector<8x128xbf16> -> vector<24x128xbf16>
    %c0_9 = arith.constant 0 : index
    %c0_10 = arith.constant 0 : index
    %20 = vector.load %arg6[%c0_9, %c0_10] : memref<8x24xbf16, #tpu.memory_space<vmem>>, vector<8x24xbf16>
    %cst_11 = arith.constant dense<0.000000e+00> : vector<8x128xf32>
    %21 = tpu.matmul %20, %19, %cst_11 {dimension_numbers = #tpu.dot_dimension_numbers<[1], [0], [0], [1], [0, 0, 1, 1], [], []>} : vector<8x24xbf16>, vector<24x128xbf16>, vector<8x128xf32> -> vector<8x128xf32>
    %c0_12 = arith.constant 0 : index
    %c0_13 = arith.constant 0 : index
    %22 = vector.load %arg7[%c0_12, %c0_13] : memref<8x1xf32, #tpu.memory_space<vmem>>, vector<8x1xf32>
    %23 = vector.broadcast %22 : vector<8x1xf32> to vector<8x128xf32>
    %24 = arith.addf %21, %23 : vector<8x128xf32>
    %cst_14 = arith.constant 0.000000e+00 : f32
    %25 = vector.broadcast %cst_14 : f32 to vector<8x128xf32>
    %26 = arith.cmpf oge, %24, %25 : vector<8x128xf32>
    %cst_15 = arith.constant 1.000000e-01 : f32
    %27 = vector.broadcast %cst_15 : f32 to vector<8x128xf32>
    %28 = arith.mulf %27, %24 : vector<8x128xf32>
    %29 = arith.select %26, %24, %28 : vector<8x128xi1>, vector<8x128xf32>
    %c0_16 = arith.constant 0 : index
    %c0_17 = arith.constant 0 : index
    %c0_18 = arith.constant 0 : index
    %30 = vector.load %arg8[%c0_16, %c0_17, %c0_18] : memref<1x8x128xf32, #tpu.memory_space<vmem>>, vector<1x8x128xf32>
    %31 = vector.shape_cast %30 : vector<1x8x128xf32> to vector<8x128xf32>
    %32 = vector.shape_cast %29 : vector<8x128xf32> to vector<1x8x128xf32>
    tpu.vector_store %arg8[%c0_16, %c0_17, %c0_18], %32 {strides = array<i32>} : memref<1x8x128xf32, #tpu.memory_space<vmem>>, vector<1x8x128xf32>,
    return
  }
  func.func @transform_0(%arg0: i32, %arg1: i32) -> (i32, i32, i32) {
    %c0_i32 = arith.constant 0 : i32
    %c0_i32_0 = arith.constant 0 : i32
    return %arg0, %c0_i32, %arg1 : i32, i32, i32
  }
  func.func @transform_1(%arg0: i32, %arg1: i32) -> (i32, i32, i32) {
    %c1_i32 = arith.constant 1 : i32
    %0 = arith.addi %arg1, %c1_i32 : i32
    %c0_i32 = arith.constant 0 : i32
    %c0_i32_0 = arith.constant 0 : i32
    return %arg0, %c0_i32, %0 : i32, i32, i32
  }
  func.func @transform_2(%arg0: i32, %arg1: i32) -> (i32, i32) {
    %c0_i32 = arith.constant 0 : i32
    %c0_i32_0 = arith.constant 0 : i32
    %c0_i32_1 = arith.constant 0 : i32
    return %c0_i32, %c0_i32_0 : i32, i32
  }
  func.func @transform_3(%arg0: i32, %arg1: i32) -> (i32, i32) {
    %c0_i32 = arith.constant 0 : i32
    %c0_i32_0 = arith.constant 0 : i32
    %c0_i32_1 = arith.constant 0 : i32
    return %c0_i32, %c0_i32_0 : i32, i32
  }
  func.func @transform_4(%arg0: i32, %arg1: i32) -> (i32, i32) {
    %c0_i32 = arith.constant 0 : i32
    %c0_i32_0 = arith.constant 0 : i32
    %c0_i32_1 = arith.constant 0 : i32
    return %c0_i32, %c0_i32_0 : i32, i32
  }
  func.func @transform_5(%arg0: i32, %arg1: i32) -> (i32, i32) {
    %c0_i32 = arith.constant 0 : i32
    %c0_i32_0 = arith.constant 0 : i32
    %c0_i32_1 = arith.constant 0 : i32
    return %c0_i32, %c0_i32_0 : i32, i32
  }
  func.func @transform_6(%arg0: i32, %arg1: i32) -> (i32, i32, i32) {
    %c0_i32 = arith.constant 0 : i32
    %c0_i32_0 = arith.constant 0 : i32
    return %arg0, %c0_i32, %arg1 : i32, i32, i32
  }
}

</mosaic_0001>

<bundles_post_ra>
// kernel: tpu_custom_call.1
= control target key start
LH: loop header
LB: loop body
LE: loop exit
PB: predicated region body
PF: predicated region fallthrough
CT: control target
= control target key end

     0   :  { %11 = vsyncpa [#allocation3], 0  ;;  %s1038_s0 = inlined_call_operand.vmem [shape: f32[2,4,256], index: 0, kind: input, shape index: {}]   ;;  %s1039_s1 = inlined_call_operand.hbm [shape: f32[2,4,256], index: 1, kind: input, shape index: {}]   ;;  %s1040_s2 = inlined_call_operand.vmem [shape: bf16[8,12], index: 2, kind: input, shape index: {}]   ;;  %s1041_s3 = inlined_call_operand.vmem [shape: f32[8,1], index: 3, kind: input, shape index: {}]   ;;  %s1042_s4 = inlined_call_operand.vmem [shape: bf16[8,24], index: 4, kind: input, shape index: {}]   ;;  %s1043_s5 = inlined_call_operand.vmem [shape: f32[8,1], index: 5, kind: input, shape index: {}]   ;;  %s1044_s6 = inlined_call_operand.hbm [shape: f32[2,8,128], index: 6, kind: output, shape index: {}]  }
   0x1   :  { %13 = vsyncpa [#allocation3 + $0x1], 0 }
   0x2   :  { %14 = vsyncpa [#allocation4], 0 }
   0x3   :  { %16 = vsyncpa [#allocation4 + $0x1], 0  ;;  %s858_s21 = smov 0   ;;  %s860_s22 = smov 0  }
   0x4   :  { %s862_s23 = smov 0   ;;  %s864_s24 = smov 0  }
   0x5   :  { %s866_s25 = smov 0   ;;  %s868_s26 = smov 0  }
   0x6 LB: > { %s605_s27 = sadd.s32 4294967295, %s814_s26   ;;  %s606_s28 = sadd.s32 4294967294, %s814_s26   ;;  %s814_s26 = sphi %s868_s26, %s22_s26   ;;  %s810_s25 = sphi %s866_s25, %s1056_s25   ;;  %s806_s24 = sphi %s864_s24, %s1055_s24   ;;  %s802_s23 = sphi %s862_s23, %s1054_s23   ;;  %s798_s22 = sphi %s860_s22, %s1053_s22   ;;  %s794_s21 = sphi %s858_s21, %s1052_s21  }
   0x7   : > { %s34_s29 = sadd.s32 1, %s810_s25  ;;  %s73_s30 = sadd.s32 1, %s802_s23 }
   0x8   : > { %p36_p0 = scmp.ge.s32.totalorder %s34_s29, 2  ;;  %p80_p1 = scmp.ne.s32.totalorder %s802_s23, %s798_s22 }
   0x9   : > { %p81_p2 = scmp.eq.s32.totalorder %s814_s26, 0  ;;  %p86_p3 = scmp.ne.s32.totalorder %s798_s22, %s794_s21 }
   0xa   : > { %s1058_s29 = smov (%p36_p0, %s34_s29), 0  ;;  %p87_p5 = scmp.eq.s32.totalorder %s605_s27, 0 }
   0xb   : > { %p899_p4 = por %p81_p2, %p80_p1  ;;  %s68_s8 = ssub.s32 %s810_s25, %s1058_s29 }
   0xc   : > { %p196_p6 = scmp.eq.s32.totalorder %s605_s27, 1  ;;  %p71_p7 = scmp.eq.s32.totalorder %s68_s8, 0 }
   0xd   : > { %p905_p8 = por %p87_p5, %p86_p3  ;;  %p202_p10 = scmp.eq.s32.totalorder %s606_s28, 1 }
   0xe   : > { %p909_p9 = por %p196_p6, %p80_p1  ;;  %p649_p13 = scmp.lt.s32.totalorder %s814_s26, 2 }
   0xf   : > { %s914_s11 = scalar_select %p71_p7, %s802_s23, %s73_s30  }
  0x10   : > { %p916_p11 = por %p202_p10, %p86_p3  ;;  %s245_s13 = sand.u32 1, %s802_s23  }
  0x11   : > { %s609_s14 = sshll.u32 %s245_s13, 2  ;;  %s624_s15 = sshll.u32 %s810_s25, 7 }
  0x12   : > { %s1048_s12 = scalar_select %p916_p11, 1, 0 }
  0x13   : > { %s539_s18 = scalar_lea.hbm %s1039_s1, %s624_s15  ;;  %s249_s19 = scalar_lea.vmem [#allocation2], %s609_s14 }
  0x14   : > { %s259_s20 = sshll.u32 %s249_s19, 4  ;;  %s540_s27 = scalar_lea.hbm %s539_s18, 64  ;;  %s260_s20 = int_to_ptr.vmem [resolvable:$true] %s259_s20 }
  0x15   : > { %p929_p0 = pnand %p649_p13, %p899_p4  ;;  %p612_p1 = scmp.ge.s32.totalorder %s814_s26, 1 }
  0x16   : > { %p264_p2 = scmp.lt.s32.totalorder %s814_s26, 3  ;;  %s246_s30 = scalar_lea.sflag [#allocation3], %s245_s13 }
  0x17   : > { %p707_p3 = pneg %p929_p0  ;;  %s718_s8 = scalar_lea.vmem %s260_s20, 64 }
  0x18   : > { %p719_p5 = scmp.ne.s32.totalorder %s260_s20, %s718_s8  ;;  %s816_s15 = smov [#allocation2]  }
  0x19   : > { %s723_s14 = sshll.u32 %s816_s15, 4  ;;  %s724_s14 = int_to_ptr.vmem [resolvable:$false] %s723_s14 }
  0x1a   : > { %p721_p6 = pnand %p719_p5, %p707_p3  ;;  %s725_s16 = scalar_lea.vmem %s724_s14, 128 }
  0x1b   : > { %p726_p10 = scmp.lt.s32.totalorder %s260_s20, %s724_s14  ;;  %p727_p12 = scmp.lt.s32.totalorder %s725_s16, %s718_s8 }
  0x1c   : > { %p722_p7 = pneg %p721_p6 }
  0x1d   : > { %p728_p4 = por %p727_p12, %p726_p10 }
  0x1f   : > { %p729_p13 = pnand %p728_p4, %p722_p7 }
  0x21   : > { %732 = shalt.err (!%p729_p13)
}
  0x22   : > { %644 = dma.hbm_to_vmem [thread:$0]  (!%p929_p0), %s540_s27, 64, %s260_s20, %s246_s30  }
  0x23   : > { %p265_p11 = pnand %p612_p1, %p264_p2 }
  0x24   : > { %s944_s7 = sand.u32 (!%p265_p11), 1, %s798_s22  }
  0x25   : > { %268 = sbr.rel (%p265_p11) target bundleno = 716 (0x2cc), region = 44  ;;  %s613_s13 = sshll.u32 (!%p265_p11), %s944_s7, 2 }
  0x26   : > { %s271_s17 = scalar_lea.sflag (!%p265_p11), [#allocation3], %s944_s7  ;;  %s274_s18 = scalar_lea.vmem (!%p265_p11), [#allocation2], %s613_s13 }
  0x2a   : > { %785 = dma.done.wait (%p905_p8), %s271_s17, 64  }
  0x2b   : > { %787 = vsyncadd (%p905_p8), %s271_s17, 4294967232  ;;  %p311_p12 = scmp.lt.s32.totalorder %s806_s24, 1  ;;  %v322_v1 = vld [vmem:[%s274_s18] sm:$0xf]  ;;  %v817_v4 = vmov 0   ;;  %s818_s9 = smov 126  }
  0x2c   : > { %v324_v3 = vpack.c.bf16 %v322_v1, %v322_v1  ;;  %403 = vmatprep.mubr.bf16.mxu0 %v817_v4  ;;  %704 = vset.pattern.permute.xlu0 %v817_v4  ;;  %s819_s8 = smov 127   ;;  %v356_v9 = vld [vmem:[%s1041_s3] sm:$0xff]  ;;  %vm341_vm0 = vcmask 1031168   ;;  %vm333_vm1 = vcmask 1039360   ;;  %vm343_vm2 = vcmask 1041408   ;;  %s614_s27 = sshll.u32 %s944_s7, 3 }
  0x2d   : > { %s312_s19 = scalar_select %p311_p12, %s806_s24, 1  ;;  %vm350_vm3 = vcmask 1043456   ;;  %vm366_vm4 = vcmask 1045504   ;;  %v355_v21 = vld [vmem:[%s1040_s2] sm:$0xf]  ;;  %vm362_vm5 = vcmask 97280  }
  0x2e   : > { %v336_v7 = vrot.slane %v324_v3, 4  ;;  %v328_v8 = vrot.slane %v324_v3, 6  ;;  %v820_v22 = vmov 0.0   ;;  %vm821_vm6 = vmmov 0   ;;  %v433_v33 = vld [vmem:[%s1043_s5] sm:$0xff]  ;;  %s621_s28 = sshll.u32 %s806_s24, 7 }
  0x2f   : > { %s625_s20 = sshll.u32 %s312_s19, 3  ;;  %629 = vmatprep.subr.bf16.mxu1 %v820_v22  ;;  %633 = vmatprep.mubr.msk.bf16.mxu1 %vm821_vm6, %v820_v22  ;;  %v432_v43 = vld [vmem:[%s1042_s4] sm:$0xf]  ;;  %vm439_vm7 = vcmask 195584   ;;  %s990_s14 = scalar_lea.hbm %s1044_s6, %s621_s28 }
  0x30   : > { %s318_s30 = scalar_lea.vmem %s1038_s0, %s625_s20  ;;  %s491_s24 = scalar_lea.sflag [#allocation4], %s944_s7 }
  0x31   : > { %v321_v0 = vld [vmem:[%s318_s30] sm:$0xf]  ;;  %s310_s30 = scalar_lea.vmem [#allocation5], %s614_s27  ;;  %s822_s13 = smov [#allocation5]  }
  0x32   : > { %v323_v2 = vpack.c.bf16 %v321_v0, %v321_v0  ;;  %s738_s17 = sshll.u32 %s822_s13, 4  ;;  %s739_s17 = int_to_ptr.vmem [resolvable:$false] %s738_s17 }
  0x33   : > { %s740_s18 = scalar_lea.vmem %s739_s17, 256 }
  0x34   : > { %v335_v5 = vrot.slane %v323_v2, 4  ;;  %v327_v6 = vrot.slane %v323_v2, 6 }
  0x36   : > { %337 = vrot.lane.b32.xlu1 %v335_v5, %s818_s9  ;;  %329 = vrot.lane.b32.xlu0 %v327_v6, %s819_s8 }
  0x3a   : > { %339 = vrot.lane.b32.xlu1 %v336_v7, %s818_s9  ;;  %331 = vrot.lane.b32.xlu0 %v328_v8, %s819_s8 }
  0x3e   : > { %359 = vperm.xlu0 %704, %v356_v9  }
  0xa8   : > { %v338_v10 = vpop.permute.xlu1 %337  ;;  %v330_v11 = vpop.permute.xlu0 %329 }
  0xac   : > { %v340_v12 = vpop.permute.xlu1 %339  ;;  %v332_v13 = vpop.permute.xlu0 %331 }
  0xad   : > { %v342_v14 = vsel %vm341_vm0, %v338_v10, %v340_v12  ;;  %v334_v15 = vsel %vm333_vm1, %v330_v11, %v332_v13  ;;  %v349_v16 = vsel %vm343_vm2, %v324_v3, %v332_v13 }
  0xae   : > { %v354_v17 = vsel %vm350_vm3, %v349_v16, %v340_v12  ;;  %v346_v18 = vsel %vm343_vm2, %v323_v2, %v334_v15 }
  0xaf   : > { %617 = vmatprep.subr.msk.bf16.mxu0 %vm366_vm4, %v354_v17  ;;  %v352_v19 = vsel %vm350_vm3, %v346_v18, %v342_v14 }
  0xb0   : > { %v367_v20 = vsel %vm366_vm4, %v352_v19, 0 }
  0xb1   : > { %386 = vmatpush1.bf16.msra.mxu0 %v367_v20 }
  0xb4   : > { %618 = vmatmul.mubr.msk.bf16.vlgmr.msra.gmra.mxu0 %vm362_vm5, %v355_v21 }
  0xb9   : > { %v360_v23 = vpop.permute.xlu0 %359 }
 0x174   : > { %v405_v24 = vpop.f32.mrf.mxu0 }
 0x175   : > { %v406_v25 = vadd.f32 %v405_v24, %v360_v23 }
 0x176   : > { %v407_v26 = vpop.f32.mrf.mxu0 }
 0x177   : > { %v412_v27 = vpack.c.bf16 %v406_v25, %v406_v25  ;;  %v408_v28 = vadd.f32 %v407_v26, %v360_v23 }
 0x178   : > { %v409_v29 = vpop.f32.mrf.mxu0 }
 0x179   : > { %423 = vrot.lane.b32.xlu1 %v412_v27, %s818_s9  ;;  %v416_v30 = vrot.slane %v412_v27, 4  ;;  %v413_v32 = vpack.c.bf16 %v408_v28, %v408_v28 }
 0x17a   : > { %v410_v31 = vpop.f32.mrf.mxu0 }
 0x17b   : > { %418 = vrot.lane.b32.xlu0 %v416_v30, %s819_s8  ;;  %v417_v34 = vrot.slane %v413_v32, 4 }
 0x17d   : > { %425 = vrot.lane.b32.xlu1 %v413_v32, %s818_s9  ;;  %s505_s9 = sshll.u32 %s310_s30, 4  ;;  %s992_s9 = int_to_ptr.vmem [resolvable:$true] %s505_s9 }
 0x17e   : > { %s734_s16 = scalar_lea.vmem %s992_s9, 128  ;;  %p741_p1 = scmp.lt.s32.totalorder %s992_s9, %s739_s17 }
 0x17f   : > { %436 = vperm.xlu0 %704, %v433_v33   ;;  %p735_p8 = scmp.ne.s32.totalorder %s992_s9, %s734_s16  ;;  %p742_p2 = scmp.lt.s32.totalorder %s740_s18, %s734_s16 }
 0x181   : > { %420 = vrot.lane.b32.xlu1 %v417_v34, %s819_s8  ;;  %p736_p11 = pnand %p735_p8, %p909_p9  ;;  %p743_p3 = por %p742_p2, %p741_p1 }
 0x183   : > { %p737_p0 = pneg %p736_p11 }
 0x185   : > { %p744_p5 = pnand %p743_p3, %p737_p0 }
 0x1eb   : > { %v424_v35 = vpop.permute.xlu1 %423 }
 0x1ed   : > { %v419_v39 = vpop.permute.xlu0 %418 }
 0x1ef   : > { %v426_v36 = vpop.permute.xlu1 %425 }
 0x1f0   : > { %v427_v37 = vsel %vm341_vm0, %v424_v35, %v426_v36 }
 0x1f1   : > { %v444_v38 = vsel %vm350_vm3, %v427_v37, 0 }
 0x1f2   : > { %630 = vmatpush3.bf16.msra.mxu1 %v444_v38 }
 0x1f3   : > { %v421_v40 = vpop.permute.xlu1 %420  ;;  %631 = vmatprep.subr.bf16.mxu1 %v820_v22 }
 0x1f4   : > { %v422_v41 = vsel %vm333_vm1, %v419_v39, %v421_v40 }
 0x1f5   : > { %v430_v42 = vsel %vm350_vm3, %v412_v27, %v422_v41 }
 0x1f6   : > { %632 = vmatpush3.bf16.msra.mxu1 %v430_v42 }
 0x1f9   : > { %634 = vmatmul.mubr.msk.bf16.vlgmr.msra.gmra.mxu1 %vm439_vm7, %v432_v43 }
 0x1fa   : > { %v437_v44 = vpop.permute.xlu0 %436 }
 0x2b9   : > { %v480_v45 = vpop.f32.mrf.mxu1 }
 0x2ba   : > { %v481_v46 = vadd.f32 %v480_v45, %v437_v44 }
 0x2bb   : > { %v635_v47 = vpop.f32.mrf.mxu1 }
 0x2bc   : > { %vm486_vm8 = vcmp.ge.f32.partialorder %v481_v46, 0.0  ;;  %v487_v48 = vmul.f32 0.1, %v481_v46 }
 0x2bd   : > { %v483_v49 = vpop.f32.mrf.mxu1 }
 0x2be   : > { %v488_v50 = vsel %vm486_vm8, %v481_v46, %v487_v48 }
 0x2bf   : > { %v636_v51 = vpop.f32.mrf.mxu1  ;;  %489 = vst [vmem:[%s310_s30] sm:$0xff] %v488_v50 }
 0x2c0   : > { %747 = shalt.err (!%p744_p5)
}
 0x2c1   : > { %s748_s19 = scalar_lea.hbm %s990_s14, 128  ;;  %s752_s27 = scalar_lea.hbm %s1044_s6, 256 }
 0x2c2   : > { %p749_p6 = scmp.ne.s32.totalorder %s990_s14, %s748_s19  ;;  %p753_p4 = scmp.lt.s32.totalorder %s990_s14, %s1044_s6 }
 0x2c3   : > { %p754_p13 = scmp.lt.s32.totalorder %s752_s27, %s748_s19 }
 0x2c4   : > { %p750_p7 = pnand %p749_p6, %p909_p9 }
 0x2c5   : > { %p755_p12 = por %p754_p13, %p753_p4 }
 0x2c6   : > { %p751_p10 = pneg %p750_p7 }
 0x2c8   : > { %p756_p8 = pnand %p755_p12, %p751_p10 }
 0x2ca   : > { %759 = shalt.err (!%p756_p8)
}
 0x2cb   : > { %639 = dma.vmem_to_hbm [thread:$0]  (%p909_p9), %s992_s9, 128, %s990_s14, %s491_s24  }
 0x2cc PF: > { %s517_s8 = sand.u32 1, %s794_s21   ;;  %p1050_p11 = scmp.ne.s32.totalorder %s1048_s12, 0 }
 0x2cd   : > { %p1051_p0 = scmp.ge.s32.totalorder %s814_s26, 2  ;;  %s518_s15 = scalar_lea.sflag [#allocation4], %s517_s8 }
 0x2cf   : > { %p646_p1 = pnand %p1051_p0, %p1050_p11 }
 0x2d1   : > { %p647_p2 = pneg %p646_p1 }
 0x2d3   : > { %789 = dma.done.wait (%p647_p2), %s518_s15, 128  }
 0x2d4   : > { %791 = vsyncadd (%p647_p2), %s518_s15, 4294967168  ;;  %s22_s26 = sadd.s32 1, %s814_s26   ;;  %s1052_s21 = smov %s798_s22 }
 0x2d5   : > { %p19_p3 = scmp.ge.s32.totalorder %s22_s26, 4   ;;  %s1053_s22 = smov %s802_s23 }
 0x2d6   : > { %s1054_s23 = smov %s914_s11  ;;  %s1055_s24 = smov %s810_s25 }
 0x2d7   : > { %s1056_s25 = smov %s1058_s29  ;;  %21 = sbr.rel (!%p19_p3) target bundleno = 6 (0x6), region = 92 }
 0x2dc   :  { %523 = vsyncpa [#allocation3], 1 }
 0x2dd   :  { %525 = vsyncpa [#allocation3 + $0x1], 1 }
 0x2de   :  { %526 = vsyncpa [#allocation4], 1 }
 0x2df   :  { %528 = vsyncpa [#allocation4 + $0x1], 1 }

</bundles_post_ra>
